<compile_context>
chip_gen: v5e
topology: v5e:2x2
jax: 0.10.0
libtpu: 0.0.40
codegen_flags: <defaults>
</compile_context>

<pallas_src>
import jax
import jax.numpy as jnp
from jax.experimental import pallas as pl
from jax.experimental.pallas import tpu as pltpu


def _neuroplastic_kernel(x_ref, w_ref, b_ref, out_ref):
    # x_ref:  [TILE_M, H]   row tile of flattened input
    # w_ref:  [H, H]        fused weight, already transposed to [in, out]
    # b_ref:  [1, H]        fixed_projection.bias
    # out_ref:[TILE_M, H]
    acc = jnp.dot(x_ref[...], w_ref[...], preferred_element_type=jnp.float32)
    out_ref[...] = (acc + b_ref[...]).astype(out_ref.dtype)


def _pick_tile_m(M, H, itemsize=4, vmem_budget=12 * 1024 * 1024):
    """Largest row tile (divisor of M, multiple of 8) whose double-buffered
    x/out tiles plus the resident weight fit a conservative VMEM budget."""
    weight_bytes = H * H * itemsize * 2          # weight (double-buffered worst case)
    per_row_bytes = 4 * H * itemsize             # x + out, each double-buffered
    avail = max(vmem_budget - weight_bytes, per_row_bytes * 8)
    max_rows = max(avail // per_row_bytes, 8)
    for t in (2048, 1024, 512, 256, 128, 64, 32, 16, 8):
        if t <= max_rows and M % t == 0:
            return t
    return M  # fall back to a single full block (always a legal block shape)


def neuroplasticity_forward(x, w_fixed, b_fixed, w_plastic):
    """x: [B, S, H] float32. Returns [B, S, H] float32."""
    B, S, H = x.shape
    M = B * S
    x2d = x.reshape(M, H)

    # Fuse the two linears: (x @ Wf^T + b) + (x @ Wp^T) == x @ (Wf + Wp)^T + b.
    # Sum + transpose once here (layout plumbing, runs as a cheap XLA op) so the
    # kernel does a single plain [M,H] @ [H,H] MXU matmul with no in-kernel transpose.
    w_fused_t = (w_fixed + w_plastic).T.astype(x.dtype)   # [in, out]
    b2d = b_fixed.reshape(1, H).astype(jnp.float32)

    tile_m = _pick_tile_m(M, H, jnp.dtype(x.dtype).itemsize)
    grid = (M // tile_m,)

    out2d = pl.pallas_call(
        _neuroplastic_kernel,
        out_shape=jax.ShapeDtypeStruct((M, H), jnp.float32),
        grid=grid,
        in_specs=[
            pl.BlockSpec((tile_m, H), lambda i: (i, 0)),   # x: tiled over rows
            pl.BlockSpec((H, H), lambda i: (0, 0)),        # fused weight: resident
            pl.BlockSpec((1, H), lambda i: (0, 0)),        # bias: resident
        ],
        out_specs=pl.BlockSpec((tile_m, H), lambda i: (i, 0)),
        compiler_params=pltpu.CompilerParams(
            dimension_semantics=("parallel",),             # let v7x split tiles across TCs
            vmem_limit_bytes=32 * 1024 * 1024,
        ),
    )(x2d, w_fused_t, b2d)

    return out2d.reshape(B, S, H)


if __name__ == "__main__":
    # Small shapes consistent with the module: batch=2, seq=8, hidden=32.
    B, S, H = 2, 8, 32
    key = jax.random.PRNGKey(0)
    k_x, k_wp, k_wf, k_bf = jax.random.split(key, 4)

    # Deterministic parameter init (synthetic, mirrors shapes from __init__):
    #   plastic_weights: xavier_normal_  -> std = sqrt(2 / (H + H))
    #   fixed_projection: nn.Linear(H, H) weight + bias
    xavier_std = (2.0 / (H + H)) ** 0.5
    w_plastic = xavier_std * jax.random.normal(k_wp, (H, H), dtype=jnp.float32)
    lin_bound = 1.0 / (H ** 0.5)
    w_fixed = jax.random.uniform(k_wf, (H, H), minval=-lin_bound, maxval=lin_bound,
                                 dtype=jnp.float32)
    b_fixed = jax.random.uniform(k_bf, (H,), minval=-lin_bound, maxval=lin_bound,
                                 dtype=jnp.float32)

    x = jax.random.normal(k_x, (B, S, H), dtype=jnp.float32)

    out = neuroplasticity_forward(x, w_fixed, b_fixed, w_plastic)
    out = jax.block_until_ready(out)

    # Reference (plain JAX) check of the forward semantics.
    ref = (x @ w_fixed.T + b_fixed) + (x @ w_plastic.T)
    assert out.shape == (B, S, H)
    assert jnp.allclose(out, ref, atol=1e-5, rtol=1e-5), "mismatch vs reference"

    print("KERNEL_OK")
</pallas_src>

<mosaic_0001>
module attributes {stable_mosaic.version = 11 : i64} {
  func.func @_neuroplastic_kernel(%arg0: i32, %arg1: memref<16x32xf32, #tpu.memory_space<vmem>>, %arg2: memref<32x32xf32, #tpu.memory_space<vmem>>, %arg3: memref<1x32xf32, #tpu.memory_space<vmem>>, %arg4: memref<16x32xf32, #tpu.memory_space<vmem>>) attributes {dimension_semantics = [#tpu.dimension_semantics<parallel>], iteration_bounds = array<i64: 1>, scalar_prefetch = 0 : i64, scratch_operands = 0 : i64, tpu.core_type = #tpu.core_type<tc>, window_params = [{transform_indices = @transform_0, window_bounds = array<i64: 16, 32>}, {pipeline_mode = #tpu.pipeline_mode<synchronous>, transform_indices = @transform_1, window_bounds = array<i64: 32, 32>}, {pipeline_mode = #tpu.pipeline_mode<synchronous>, transform_indices = @transform_2, window_bounds = array<i64: 1, 32>}, {transform_indices = @transform_3, window_bounds = array<i64: 16, 32>}]} {
    %c0 = arith.constant 0 : index
    %c0_0 = arith.constant 0 : index
    %0 = vector.load %arg1[%c0, %c0_0] : memref<16x32xf32, #tpu.memory_space<vmem>>, vector<16x32xf32>
    %c0_1 = arith.constant 0 : index
    %c0_2 = arith.constant 0 : index
    %1 = vector.load %arg2[%c0_1, %c0_2] : memref<32x32xf32, #tpu.memory_space<vmem>>, vector<32x32xf32>
    %cst = arith.constant dense<0.000000e+00> : vector<16x32xf32>
    %2 = tpu.matmul %0, %1, %cst {dimension_numbers = #tpu.dot_dimension_numbers<[1], [0], [0], [1], [0, 0, 1, 1], [], []>} : vector<16x32xf32>, vector<32x32xf32>, vector<16x32xf32> -> vector<16x32xf32>
    %c0_3 = arith.constant 0 : index
    %c0_4 = arith.constant 0 : index
    %3 = vector.load %arg3[%c0_3, %c0_4] : memref<1x32xf32, #tpu.memory_space<vmem>>, vector<1x32xf32>
    %4 = vector.broadcast %3 : vector<1x32xf32> to vector<16x32xf32>
    %5 = arith.addf %2, %4 : vector<16x32xf32>
    %c0_5 = arith.constant 0 : index
    %c0_6 = arith.constant 0 : index
    %6 = vector.load %arg4[%c0_5, %c0_6] : memref<16x32xf32, #tpu.memory_space<vmem>>, vector<16x32xf32>
    tpu.vector_store %arg4[%c0_5, %c0_6], %5 {strides = array<i32>} : memref<16x32xf32, #tpu.memory_space<vmem>>, vector<16x32xf32>,
    return
  }
  func.func @transform_0(%arg0: i32) -> (i32, i32) {
    %c0_i32 = arith.constant 0 : i32
    %c0_i32_0 = arith.constant 0 : i32
    return %arg0, %c0_i32 : i32, i32
  }
  func.func @transform_1(%arg0: i32) -> (i32, i32) {
    %c0_i32 = arith.constant 0 : i32
    %c0_i32_0 = arith.constant 0 : i32
    %c0_i32_1 = arith.constant 0 : i32
    return %c0_i32, %c0_i32_0 : i32, i32
  }
  func.func @transform_2(%arg0: i32) -> (i32, i32) {
    %c0_i32 = arith.constant 0 : i32
    %c0_i32_0 = arith.constant 0 : i32
    %c0_i32_1 = arith.constant 0 : i32
    return %c0_i32, %c0_i32_0 : i32, i32
  }
  func.func @transform_3(%arg0: i32) -> (i32, i32) {
    %c0_i32 = arith.constant 0 : i32
    %c0_i32_0 = arith.constant 0 : i32
    return %arg0, %c0_i32 : i32, i32
  }
}

</mosaic_0001>

<bundles_post_ra>
// kernel: tpu_custom_call.1
= control target key start
LH: loop header
LB: loop body
LE: loop exit
PB: predicated region body
PF: predicated region fallthrough
CT: control target
= control target key end

     0   :  { %8 = vsyncpa [#allocation3], 0  ;;  %s249_s0 = inlined_call_operand.hbm [shape: f32[16,32], index: 0, kind: input, shape index: {}]   ;;  %s250_s1 = inlined_call_operand.hbm [shape: f32[32,32], index: 1, kind: input, shape index: {}]   ;;  %s251_s2 = inlined_call_operand.vmem [shape: f32[1,32], index: 2, kind: input, shape index: {}]   ;;  %s252_s3 = inlined_call_operand.hbm [shape: f32[16,32], index: 3, kind: output, shape index: {}]  }
   0x1   :  { %9 = vsyncpa [#allocation6], 0 }
   0x2   :  { %10 = vsyncpa [#allocation4], 0  ;;  %s15_s14 = sshll.u32 %s249_s0, 4  ;;  %s199_s15 = smov [#allocation2]   ;;  %s16_s14 = int_to_ptr.hbm [resolvable:$true] %s15_s14 }
   0x3   :  { %s17_s16 = sshll.u32 %s199_s15, 4  ;;  %s28_s19 = sshll.u32 %s250_s1, 4  ;;  %s18_s16 = int_to_ptr.vmem [resolvable:$true] %s17_s16  ;;  %s29_s19 = int_to_ptr.hbm [resolvable:$true] %s28_s19 }
   0x4   :  { %s200_s20 = smov 128   ;;  %s201_s21 = smov 8  }
   0x5   :  { %23 = dma.hbm_to_vmem [thread:$0]  %s16_s14, 256, %s18_s16, [#allocation3], %s200_s20, %s200_s20, %s201_s21  }
   0x6   :  { %s202_s22 = smov [#allocation5]  }
   0x7   :  { %s30_s23 = sshll.u32 %s202_s22, 4  ;;  %s31_s23 = int_to_ptr.vmem [resolvable:$true] %s30_s23 }
   0x8   :  { %36 = dma.hbm_to_vmem [thread:$0]  %s29_s19, 512, %s31_s23, [#allocation6], %s200_s20, %s200_s20, %s201_s21  }
   0x9   :  { %193 = dma.done.wait [#allocation3], 256  }
   0xa   :  { %194 = vsyncadd [#allocation3], 4294967040 }
   0xb   :  { %195 = dma.done.wait [#allocation6], 512  }
   0xc   :  { %196 = vsyncadd [#allocation6], 4294966784  ;;  %v52_v0 = vld [vmem:[#allocation5 + $0x18] sm:$0xff]  ;;  %v51_v1 = vld [vmem:[#allocation5 + $0x10] sm:$0xff]  ;;  %vm57_vm0 = vcmask 261120   ;;  %s203_s24 = smov [#allocation7]  }
   0xd   :  { %76 = vmatpush.msra.mxu0 %v52_v0  ;;  %111 = vmatpush.msra.mxu1 %v52_v0  ;;  %v50_v2 = vld [vmem:[#allocation5 + $0x8] sm:$0xff]  ;;  %v49_v3 = vld [vmem:[#allocation5] sm:$0xff]  ;;  %v47_v4 = vld [vmem:[#allocation2] sm:$0xff]  ;;  %s93_s25 = sshll.u32 %s203_s24, 4  ;;  %s95_s28 = sshll.u32 %s252_s3, 4  ;;  %s94_s25 = int_to_ptr.vmem [resolvable:$true] %s93_s25  ;;  %s96_s28 = int_to_ptr.hbm [resolvable:$true] %s95_s28 }
   0xe   :  { %v48_v5 = vld [vmem:[#allocation2 + $0x8] sm:$0xff]  ;;  %v120_v6 = vld [vmem:[%s251_s2] ss:$0 sm:$0xff] }
   0xf   :  { %77 = vmatpush.msra.mxu0 %v51_v1  ;;  %112 = vmatpush.msra.mxu1 %v51_v1 }
  0x11   :  { %78 = vmatpush.msra.mxu0 %v50_v2  ;;  %113 = vmatpush.msra.mxu1 %v50_v2 }
  0x13   :  { %79 = vmatpush.msra.mxu0 %v49_v3  ;;  %114 = vmatpush.msra.mxu1 %v49_v3 }
  0x14   :  { %109 = vmatmul.msk.f32.vlgmr.msra.gmra.mxu0 %vm57_vm0, %v47_v4  ;;  %110 = vmatmul.msk.f32.vlgmr.msra.gmra.mxu1 %vm57_vm0, %v48_v5 }
  0x91   :  { %v81_v7 = vpop.f32.mrf.mxu0  ;;  %v84_v8 = vpop.f32.mrf.mxu1 }
  0x92   :  { %v82_v9 = vadd.f32 %v120_v6, %v81_v7  ;;  %v85_v10 = vadd.f32 %v120_v6, %v84_v8 }
  0x94   :  { %87 = vst.msk [vmem:[#allocation7] sm:$0xff] %vm57_vm0, %v82_v9 }
  0x95   :  { %88 = vst.msk [vmem:[#allocation7 + $0x8] sm:$0xff] %vm57_vm0, %v85_v10 }
  0x96   :  { %101 = dma.vmem_to_hbm [thread:$0]  %s94_s25, 256, %s96_s28, [#allocation4], %s200_s20, %s200_s20, %s201_s21  }
  0x97   :  { %197 = dma.done.wait [#allocation4], 256  }
  0x98   :  { %198 = vsyncadd [#allocation4], 4294967040 }
  0x99   :  { %106 = vsyncpa [#allocation3], 1 }
  0x9a   :  { %107 = vsyncpa [#allocation6], 1 }
  0x9b   :  { %108 = vsyncpa [#allocation4], 1 }

</bundles_post_ra>
